<compile_context>
chip_gen: v7x
topology: tpu7x:2x2x1
jax: 0.10.0
libtpu: 0.0.40
codegen_flags: <defaults>
</compile_context>

<pallas_src>
import functools
import math

import jax
import jax.numpy as jnp
from jax.experimental import pallas as pl
from jax.experimental.pallas import tpu as pltpu

BN_EPS = 1e-5
LANE = 128
SUBLANE = 8


def _round_up(n, m):
    return ((n + m - 1) // m) * m


# --------------------------------------------------------------------------
# Kernel
# --------------------------------------------------------------------------
def _dendritic_mlp_kernel(
    x_ref, ctx_ref,
    w0_ref, b0_ref, w1_ref, b1_ref, w2_ref, b2_ref,
    wc_ref, bc_ref, wd_ref,
    o_ref,
    *, dim_context, num_segments, units_pad,
):
    # ---- Hoisted, context-invariant dendrite gates ------------------------
    # No data dependence on the Linear/BN chain -> computed once up front so
    # the VPU/EUP work overlaps the MXU matmuls.  dim_context is tiny, so the
    # contraction is an unrolled broadcast-FMA on the VPU (f32, exact sign
    # behaviour for the argmax-|.| selection), not an MXU matmul.
    ctx = ctx_ref[...]                                        # [B, c_pad] f32
    acts = ctx[:, 0:1] * wd_ref[0:1, :]                       # [B, sum(S*U_p)]
    for k in range(1, dim_context):
        acts = acts + ctx[:, k:k + 1] * wd_ref[k:k + 1, :]

    gates = []
    off = 0
    for n_seg, u_p in zip(num_segments, units_pad):
        sel = acts[:, off:off + u_p]
        for s in range(1, n_seg):          # tiny static unroll over segments
            cand = acts[:, off + s * u_p: off + (s + 1) * u_p]
            # strict '>' keeps the earliest segment on ties (argmax semantics)
            sel = jnp.where(jnp.abs(cand) > jnp.abs(sel), cand, sel)
        gates.append(jax.nn.sigmoid(sel))  # [B, u_p] gate in [0, 1]
        off += n_seg * u_p

    # ---- Linear -> BatchNorm1d (training, affine=False) -> ReLU -----------
    def linear_bn_relu(h_bf16, w_ref, b_ref):
        # Linear on the MXU: bf16 inputs, f32 accumulation, bias in epilogue.
        h = jnp.dot(h_bf16, w_ref[...], preferred_element_type=jnp.float32)
        h = h + b_ref[...]
        mean = jnp.mean(h, axis=0, keepdims=True)
        # single-pass variance, clamped at 0 (cancellation can go slightly <0)
        var = jnp.maximum(
            jnp.mean(h * h, axis=0, keepdims=True) - mean * mean, 0.0)
        h = (h - mean) * jax.lax.rsqrt(var + BN_EPS)
        return jnp.maximum(h, 0.0)

    h = linear_bn_relu(x_ref[...], w0_ref, b0_ref) * gates[0]
    h = linear_bn_relu(h.astype(jnp.bfloat16), w1_ref, b1_ref) * gates[1]
    h = linear_bn_relu(h.astype(jnp.bfloat16), w2_ref, b2_ref) * gates[2]

    out = jnp.dot(h.astype(jnp.bfloat16), wc_ref[...],
                  preferred_element_type=jnp.float32) + bc_ref[...]
    o_ref[...] = out


# --------------------------------------------------------------------------
# Parameter init (mirrors the PyTorch module; layout packing is glue)
# --------------------------------------------------------------------------
def init_params(key, input_size, hidden_sizes, output_size, dim_context,
                num_segments, dendrite_sparsity):
    h0, h1, h2 = hidden_sizes
    keys = jax.random.split(key, 10)

    def linear(k, fan_in, fan_out):
        # init_weights(): W ~ N(0, 0.01), b = 0.  Stored [in, out].
        w = jax.random.normal(k, (fan_in, fan_out), jnp.float32) * 0.01
        b = jnp.zeros((fan_out,), jnp.float32)
        return w, b

    def dendrite(kw, km, units, segs, sparsity):
        # DendriteSegments weights: [units, segments, dim_context], sparsified.
        bound = 1.0 / math.sqrt(dim_context)
        w = jax.random.uniform(kw, (units, segs, dim_context), jnp.float32,
                               -bound, bound)
        keep = jax.random.bernoulli(km, 1.0 - sparsity,
                                    (units, segs, dim_context))
        return w * keep

    w0, b0 = linear(keys[0], input_size, h0)
    wd0 = dendrite(keys[1], keys[2], h0, num_segments[0], dendrite_sparsity[0])
    w1, b1 = linear(keys[3], h0, h1)
    wd1 = dendrite(keys[4], keys[5], h1, num_segments[1], dendrite_sparsity[1])
    w2, b2 = linear(keys[6], h1, h2)
    wd2 = dendrite(keys[7], keys[8], h2, num_segments[2], dendrite_sparsity[2])
    wc, bc = linear(keys[9], h2, output_size)
    return ((w0, b0, wd0), (w1, b1, wd1), (w2, b2, wd2), (wc, bc))


def pack_params(params, dim_context):
    """Pad feature dims to 128 lanes for the MXU weights (bf16); pack all
    dendrite weights into ONE f32 table with the tiny contraction dim along
    sublanes (padded to 8), not lanes."""
    (w0, b0, wd0), (w1, b1, wd1), (w2, b2, wd2), (wc, bc) = params

    def pad_w(w):
        in_p = _round_up(w.shape[0], LANE)
        out_p = _round_up(w.shape[1], LANE)
        return jnp.pad(w, ((0, in_p - w.shape[0]),
                           (0, out_p - w.shape[1]))).astype(jnp.bfloat16)

    def pad_b(b):
        out_p = _round_up(b.shape[0], LANE)
        return jnp.pad(b, ((0, out_p - b.shape[0]),)).reshape(1, out_p)

    def pack_wd(wd):
        u, s, c = wd.shape
        u_p = _round_up(u, LANE)
        t = jnp.transpose(wd, (2, 1, 0))                       # [C, S, U]
        t = jnp.pad(t, ((0, 0), (0, 0), (0, u_p - u)))         # [C, S, U_p]
        return t.reshape(c, s * u_p).astype(jnp.float32)       # col = s*U_p+u

    # Concatenate the three blocks along lanes (offsets are 128-multiples),
    # pad the contraction rows 2 -> 8 sublanes (zero rows are never read).
    wd_all = jnp.concatenate([pack_wd(wd0), pack_wd(wd1), pack_wd(wd2)],
                             axis=1)
    c_sub = _round_up(dim_context, SUBLANE)
    wd_all = jnp.pad(wd_all, ((0, c_sub - dim_context), (0, 0)))

    return (pad_w(w0), pad_b(b0), pad_w(w1), pad_b(b1),
            pad_w(w2), pad_b(b2), pad_w(wc), pad_b(bc), wd_all)


# --------------------------------------------------------------------------
# Wrapper
# --------------------------------------------------------------------------
def dendritic_mlp_forward(x, packed, *, input_size, dim_context, output_size,
                          num_segments):
    (w0, b0, w1, b1, w2, b2, wc, bc, wd_all) = packed
    batch = x.shape[0]
    in_p = w0.shape[0]
    out_p = wc.shape[1]
    c_p = _round_up(dim_context, LANE)
    units_pad = (w0.shape[1], w1.shape[1], w2.shape[1])

    # Split + pad inputs to lane-dense widths (glue; padded lanes are zero).
    x_in = x[:, :input_size].astype(jnp.bfloat16)
    ctx = x[:, input_size:input_size + dim_context].astype(jnp.float32)
    x_pad = jnp.pad(x_in, ((0, 0), (0, in_p - input_size)))
    ctx_pad = jnp.pad(ctx, ((0, 0), (0, c_p - dim_context)))

    # Honest advisory cost estimate (real dim_context, repacked byte counts).
    u0, u1, u2 = units_pad
    total_cols = wd_all.shape[1]
    flops = 2 * batch * (in_p * u0 + u0 * u1 + u1 * u2 + u2 * out_p
                         + dim_context * total_cols)
    transcendentals = batch * (u0 + u1 + u2) + (u0 + u1 + u2)
    bytes_accessed = int(x_pad.size * x_pad.dtype.itemsize
                         + ctx_pad.size * 4
                         + sum(int(p.size) * p.dtype.itemsize for p in packed)
                         + batch * out_p * 4)

    kernel = functools.partial(_dendritic_mlp_kernel,
                               dim_context=dim_context,
                               num_segments=tuple(num_segments),
                               units_pad=units_pad)
    vmem = lambda: pl.BlockSpec(memory_space=pltpu.MemorySpace.VMEM)

    out = pl.pallas_call(
        kernel,
        out_shape=jax.ShapeDtypeStruct((batch, out_p), jnp.float32),
        in_specs=[vmem() for _ in range(11)],
        out_specs=vmem(),
        cost_estimate=pl.CostEstimate(flops=flops,
                                      transcendentals=transcendentals,
                                      bytes_accessed=bytes_accessed),
    )(x_pad, ctx_pad, w0, b0, w1, b1, w2, b2, wc, bc, wd_all)

    return out[:, :output_size]


# --------------------------------------------------------------------------
# Pure-JAX reference mirroring the PyTorch module
# --------------------------------------------------------------------------
def _reference_forward(x, params, input_size, dim_context):
    (w0, b0, wd0), (w1, b1, wd1), (w2, b2, wd2), (wc, bc) = params
    x_in = x[:, :input_size]
    ctx = x[:, input_size:input_size + dim_context]

    def block(h, w, b):
        h = h @ w + b
        mean = jnp.mean(h, axis=0, keepdims=True)
        var = jnp.mean((h - mean) ** 2, axis=0, keepdims=True)
        h = (h - mean) / jnp.sqrt(var + BN_EPS)
        return jnp.maximum(h, 0.0)

    def apply_dendrites(y, wd):
        acts = jnp.einsum("bk,usk->bus", ctx, wd)          # [B, U, S]
        idx = jnp.argmax(jnp.abs(acts), axis=2)
        sel = jnp.take_along_axis(acts, idx[:, :, None], axis=2)[:, :, 0]
        return y * jax.nn.sigmoid(sel)

    h = block(x_in, w0, b0)
    h = apply_dendrites(h, wd0)
    h = block(h, w1, b1)
    h = apply_dendrites(h, wd1)
    h = block(h, w2, b2)
    h = apply_dendrites(h, wd2)
    return h @ wc + bc


if __name__ == "__main__":
    INPUT_SIZE = 32
    HIDDEN_SIZES = (64, 64, 64)
    OUTPUT_SIZE = 16
    DIM_CONTEXT = 2
    NUM_SEGMENTS = (5, 5, 5)
    DENDRITE_SPARSITY = (0.5, 0.5, 0.5)
    BATCH = 16

    key = jax.random.PRNGKey(0)
    key, xkey, pkey = jax.random.split(key, 3)
    x = jax.random.normal(xkey, (BATCH, INPUT_SIZE + DIM_CONTEXT), jnp.float32)
    params = init_params(pkey, INPUT_SIZE, HIDDEN_SIZES, OUTPUT_SIZE,
                         DIM_CONTEXT, NUM_SEGMENTS, DENDRITE_SPARSITY)
    packed = pack_params(params, DIM_CONTEXT)

    out = dendritic_mlp_forward(
        x, packed, input_size=INPUT_SIZE, dim_context=DIM_CONTEXT,
        output_size=OUTPUT_SIZE, num_segments=NUM_SEGMENTS)
    out = jax.block_until_ready(out)

    ref = _reference_forward(x, params, INPUT_SIZE, DIM_CONTEXT)
    assert out.shape == (BATCH, OUTPUT_SIZE)
    max_err = float(jnp.max(jnp.abs(out - ref)))
    assert jnp.allclose(out, ref, atol=2e-2, rtol=2e-2), (
        f"mismatch vs reference, max_abs_err={max_err}")

    print("KERNEL_OK")
</pallas_src>

<mosaic_0001>
module attributes {stable_mosaic.version = 11 : i64} {
  func.func @_dendritic_mlp_kernel(%arg0: memref<16x128xbf16, #tpu.memory_space<vmem>>, %arg1: memref<16x128xf32, #tpu.memory_space<vmem>>, %arg2: memref<128x128xbf16, #tpu.memory_space<vmem>>, %arg3: memref<1x128xf32, #tpu.memory_space<vmem>>, %arg4: memref<128x128xbf16, #tpu.memory_space<vmem>>, %arg5: memref<1x128xf32, #tpu.memory_space<vmem>>, %arg6: memref<128x128xbf16, #tpu.memory_space<vmem>>, %arg7: memref<1x128xf32, #tpu.memory_space<vmem>>, %arg8: memref<128x128xbf16, #tpu.memory_space<vmem>>, %arg9: memref<1x128xf32, #tpu.memory_space<vmem>>, %arg10: memref<8x1920xf32, #tpu.memory_space<vmem>>, %arg11: memref<16x128xf32, #tpu.memory_space<vmem>>) attributes {dimension_semantics = [], scalar_prefetch = 0 : i64, scratch_operands = 0 : i64, tpu.core_type = #tpu.core_type<tc>} {
    %c0 = arith.constant 0 : index
    %c0_0 = arith.constant 0 : index
    %0 = vector.load %arg1[%c0, %c0_0] : memref<16x128xf32, #tpu.memory_space<vmem>>, vector<16x128xf32>
    %1 = vector.extract_strided_slice %0 {offsets = [0, 0], sizes = [16, 1], strides = [1, 1]} : vector<16x128xf32> to vector<16x1xf32>
    %c0_1 = arith.constant 0 : index
    %c0_2 = arith.constant 0 : index
    %2 = vector.load %arg10[%c0_1, %c0_2] : memref<8x1920xf32, #tpu.memory_space<vmem>>, vector<1x1920xf32>
    %3 = vector.broadcast %1 : vector<16x1xf32> to vector<16x1920xf32>
    %4 = vector.broadcast %2 : vector<1x1920xf32> to vector<16x1920xf32>
    %5 = arith.mulf %3, %4 : vector<16x1920xf32>
    %6 = vector.extract_strided_slice %0 {offsets = [0, 1], sizes = [16, 1], strides = [1, 1]} : vector<16x128xf32> to vector<16x1xf32>
    %c1 = arith.constant 1 : index
    %c0_3 = arith.constant 0 : index
    %7 = vector.load %arg10[%c1, %c0_3] : memref<8x1920xf32, #tpu.memory_space<vmem>>, vector<1x1920xf32>
    %8 = vector.broadcast %6 : vector<16x1xf32> to vector<16x1920xf32>
    %9 = vector.broadcast %7 : vector<1x1920xf32> to vector<16x1920xf32>
    %10 = arith.mulf %8, %9 : vector<16x1920xf32>
    %11 = arith.addf %5, %10 : vector<16x1920xf32>
    %12 = vector.extract_strided_slice %11 {offsets = [0, 0], sizes = [16, 128], strides = [1, 1]} : vector<16x1920xf32> to vector<16x128xf32>
    %13 = vector.extract_strided_slice %11 {offsets = [0, 128], sizes = [16, 128], strides = [1, 1]} : vector<16x1920xf32> to vector<16x128xf32>
    %14 = math.absf %13 : vector<16x128xf32>
    %15 = math.absf %12 : vector<16x128xf32>
    %16 = arith.cmpf ogt, %14, %15 : vector<16x128xf32>
    %17 = arith.select %16, %13, %12 : vector<16x128xi1>, vector<16x128xf32>
    %18 = vector.extract_strided_slice %11 {offsets = [0, 256], sizes = [16, 128], strides = [1, 1]} : vector<16x1920xf32> to vector<16x128xf32>
    %19 = math.absf %18 : vector<16x128xf32>
    %20 = math.absf %17 : vector<16x128xf32>
    %21 = arith.cmpf ogt, %19, %20 : vector<16x128xf32>
    %22 = arith.select %21, %18, %17 : vector<16x128xi1>, vector<16x128xf32>
    %23 = vector.extract_strided_slice %11 {offsets = [0, 384], sizes = [16, 128], strides = [1, 1]} : vector<16x1920xf32> to vector<16x128xf32>
    %24 = math.absf %23 : vector<16x128xf32>
    %25 = math.absf %22 : vector<16x128xf32>
    %26 = arith.cmpf ogt, %24, %25 : vector<16x128xf32>
    %27 = arith.select %26, %23, %22 : vector<16x128xi1>, vector<16x128xf32>
    %28 = vector.extract_strided_slice %11 {offsets = [0, 512], sizes = [16, 128], strides = [1, 1]} : vector<16x1920xf32> to vector<16x128xf32>
    %29 = math.absf %28 : vector<16x128xf32>
    %30 = math.absf %27 : vector<16x128xf32>
    %31 = arith.cmpf ogt, %29, %30 : vector<16x128xf32>
    %32 = arith.select %31, %28, %27 : vector<16x128xi1>, vector<16x128xf32>
    %33 = arith.negf %32 : vector<16x128xf32>
    %34 = math.exp %33 : vector<16x128xf32>
    %cst = arith.constant 1.000000e+00 : f32
    %35 = vector.broadcast %cst : f32 to vector<16x128xf32>
    %36 = arith.addf %35, %34 : vector<16x128xf32>
    %37 = arith.divf %35, %36 : vector<16x128xf32>
    %38 = vector.extract_strided_slice %11 {offsets = [0, 640], sizes = [16, 128], strides = [1, 1]} : vector<16x1920xf32> to vector<16x128xf32>
    %39 = vector.extract_strided_slice %11 {offsets = [0, 768], sizes = [16, 128], strides = [1, 1]} : vector<16x1920xf32> to vector<16x128xf32>
    %40 = math.absf %39 : vector<16x128xf32>
    %41 = math.absf %38 : vector<16x128xf32>
    %42 = arith.cmpf ogt, %40, %41 : vector<16x128xf32>
    %43 = arith.select %42, %39, %38 : vector<16x128xi1>, vector<16x128xf32>
    %44 = vector.extract_strided_slice %11 {offsets = [0, 896], sizes = [16, 128], strides = [1, 1]} : vector<16x1920xf32> to vector<16x128xf32>
    %45 = math.absf %44 : vector<16x128xf32>
    %46 = math.absf %43 : vector<16x128xf32>
    %47 = arith.cmpf ogt, %45, %46 : vector<16x128xf32>
    %48 = arith.select %47, %44, %43 : vector<16x128xi1>, vector<16x128xf32>
    %49 = vector.extract_strided_slice %11 {offsets = [0, 1024], sizes = [16, 128], strides = [1, 1]} : vector<16x1920xf32> to vector<16x128xf32>
    %50 = math.absf %49 : vector<16x128xf32>
    %51 = math.absf %48 : vector<16x128xf32>
    %52 = arith.cmpf ogt, %50, %51 : vector<16x128xf32>
    %53 = arith.select %52, %49, %48 : vector<16x128xi1>, vector<16x128xf32>
    %54 = vector.extract_strided_slice %11 {offsets = [0, 1152], sizes = [16, 128], strides = [1, 1]} : vector<16x1920xf32> to vector<16x128xf32>
    %55 = math.absf %54 : vector<16x128xf32>
    %56 = math.absf %53 : vector<16x128xf32>
    %57 = arith.cmpf ogt, %55, %56 : vector<16x128xf32>
    %58 = arith.select %57, %54, %53 : vector<16x128xi1>, vector<16x128xf32>
    %59 = arith.negf %58 : vector<16x128xf32>
    %60 = math.exp %59 : vector<16x128xf32>
    %cst_4 = arith.constant 1.000000e+00 : f32
    %61 = vector.broadcast %cst_4 : f32 to vector<16x128xf32>
    %62 = arith.addf %61, %60 : vector<16x128xf32>
    %63 = arith.divf %61, %62 : vector<16x128xf32>
    %64 = vector.extract_strided_slice %11 {offsets = [0, 1280], sizes = [16, 128], strides = [1, 1]} : vector<16x1920xf32> to vector<16x128xf32>
    %65 = vector.extract_strided_slice %11 {offsets = [0, 1408], sizes = [16, 128], strides = [1, 1]} : vector<16x1920xf32> to vector<16x128xf32>
    %66 = math.absf %65 : vector<16x128xf32>
    %67 = math.absf %64 : vector<16x128xf32>
    %68 = arith.cmpf ogt, %66, %67 : vector<16x128xf32>
    %69 = arith.select %68, %65, %64 : vector<16x128xi1>, vector<16x128xf32>
    %70 = vector.extract_strided_slice %11 {offsets = [0, 1536], sizes = [16, 128], strides = [1, 1]} : vector<16x1920xf32> to vector<16x128xf32>
    %71 = math.absf %70 : vector<16x128xf32>
    %72 = math.absf %69 : vector<16x128xf32>
    %73 = arith.cmpf ogt, %71, %72 : vector<16x128xf32>
    %74 = arith.select %73, %70, %69 : vector<16x128xi1>, vector<16x128xf32>
    %75 = vector.extract_strided_slice %11 {offsets = [0, 1664], sizes = [16, 128], strides = [1, 1]} : vector<16x1920xf32> to vector<16x128xf32>
    %76 = math.absf %75 : vector<16x128xf32>
    %77 = math.absf %74 : vector<16x128xf32>
    %78 = arith.cmpf ogt, %76, %77 : vector<16x128xf32>
    %79 = arith.select %78, %75, %74 : vector<16x128xi1>, vector<16x128xf32>
    %80 = vector.extract_strided_slice %11 {offsets = [0, 1792], sizes = [16, 128], strides = [1, 1]} : vector<16x1920xf32> to vector<16x128xf32>
    %81 = math.absf %80 : vector<16x128xf32>
    %82 = math.absf %79 : vector<16x128xf32>
    %83 = arith.cmpf ogt, %81, %82 : vector<16x128xf32>
    %84 = arith.select %83, %80, %79 : vector<16x128xi1>, vector<16x128xf32>
    %85 = arith.negf %84 : vector<16x128xf32>
    %86 = math.exp %85 : vector<16x128xf32>
    %cst_5 = arith.constant 1.000000e+00 : f32
    %87 = vector.broadcast %cst_5 : f32 to vector<16x128xf32>
    %88 = arith.addf %87, %86 : vector<16x128xf32>
    %89 = arith.divf %87, %88 : vector<16x128xf32>
    %c0_6 = arith.constant 0 : index
    %c0_7 = arith.constant 0 : index
    %90 = vector.load %arg0[%c0_6, %c0_7] : memref<16x128xbf16, #tpu.memory_space<vmem>>, vector<16x128xbf16>
    %c0_8 = arith.constant 0 : index
    %c0_9 = arith.constant 0 : index
    %91 = vector.load %arg2[%c0_8, %c0_9] : memref<128x128xbf16, #tpu.memory_space<vmem>>, vector<128x128xbf16>
    %cst_10 = arith.constant dense<0.000000e+00> : vector<16x128xf32>
    %92 = tpu.matmul %90, %91, %cst_10 {dimension_numbers = #tpu.dot_dimension_numbers<[1], [0], [0], [1], [0, 0, 1, 1], [], []>} : vector<16x128xbf16>, vector<128x128xbf16>, vector<16x128xf32> -> vector<16x128xf32>
    %c0_11 = arith.constant 0 : index
    %c0_12 = arith.constant 0 : index
    %93 = vector.load %arg3[%c0_11, %c0_12] : memref<1x128xf32, #tpu.memory_space<vmem>>, vector<1x128xf32>
    %94 = vector.broadcast %93 : vector<1x128xf32> to vector<16x128xf32>
    %95 = arith.addf %92, %94 : vector<16x128xf32>
    %cst_13 = arith.constant dense<0.000000e+00> : vector<128xf32>
    %96 = vector.multi_reduction <add>, %95, %cst_13 [0] : vector<16x128xf32> to vector<128xf32>
    %97 = vector.shape_cast %96 : vector<128xf32> to vector<1x128xf32>
    %cst_14 = arith.constant 1.600000e+01 : f32
    %98 = vector.broadcast %cst_14 : f32 to vector<1x128xf32>
    %99 = arith.divf %97, %98 : vector<1x128xf32>
    %100 = arith.mulf %95, %95 : vector<16x128xf32>
    %cst_15 = arith.constant dense<0.000000e+00> : vector<128xf32>
    %101 = vector.multi_reduction <add>, %100, %cst_15 [0] : vector<16x128xf32> to vector<128xf32>
    %102 = vector.shape_cast %101 : vector<128xf32> to vector<1x128xf32>
    %cst_16 = arith.constant 1.600000e+01 : f32
    %103 = vector.broadcast %cst_16 : f32 to vector<1x128xf32>
    %104 = arith.divf %102, %103 : vector<1x128xf32>
    %105 = arith.mulf %99, %99 : vector<1x128xf32>
    %106 = arith.subf %104, %105 : vector<1x128xf32>
    %cst_17 = arith.constant 0.000000e+00 : f32
    %107 = vector.broadcast %cst_17 : f32 to vector<1x128xf32>
    %108 = arith.maximumf %106, %107 : vector<1x128xf32>
    %109 = vector.broadcast %99 : vector<1x128xf32> to vector<16x128xf32>
    %110 = arith.subf %95, %109 : vector<16x128xf32>
    %cst_18 = arith.constant 9.99999974E-6 : f32
    %111 = vector.broadcast %cst_18 : f32 to vector<1x128xf32>
    %112 = arith.addf %108, %111 : vector<1x128xf32>
    %113 = math.rsqrt %112 : vector<1x128xf32>
    %114 = vector.broadcast %113 : vector<1x128xf32> to vector<16x128xf32>
    %115 = arith.mulf %110, %114 : vector<16x128xf32>
    %cst_19 = arith.constant 0.000000e+00 : f32
    %116 = vector.broadcast %cst_19 : f32 to vector<16x128xf32>
    %117 = arith.maximumf %115, %116 : vector<16x128xf32>
    %118 = arith.mulf %117, %37 : vector<16x128xf32>
    %119 = arith.truncf %118 : vector<16x128xf32> to vector<16x128xbf16>
    %c0_20 = arith.constant 0 : index
    %c0_21 = arith.constant 0 : index
    %120 = vector.load %arg4[%c0_20, %c0_21] : memref<128x128xbf16, #tpu.memory_space<vmem>>, vector<128x128xbf16>
    %cst_22 = arith.constant dense<0.000000e+00> : vector<16x128xf32>
    %121 = tpu.matmul %119, %120, %cst_22 {dimension_numbers = #tpu.dot_dimension_numbers<[1], [0], [0], [1], [0, 0, 1, 1], [], []>} : vector<16x128xbf16>, vector<128x128xbf16>, vector<16x128xf32> -> vector<16x128xf32>
    %c0_23 = arith.constant 0 : index
    %c0_24 = arith.constant 0 : index
    %122 = vector.load %arg5[%c0_23, %c0_24] : memref<1x128xf32, #tpu.memory_space<vmem>>, vector<1x128xf32>
    %123 = vector.broadcast %122 : vector<1x128xf32> to vector<16x128xf32>
    %124 = arith.addf %121, %123 : vector<16x128xf32>
    %cst_25 = arith.constant dense<0.000000e+00> : vector<128xf32>
    %125 = vector.multi_reduction <add>, %124, %cst_25 [0] : vector<16x128xf32> to vector<128xf32>
    %126 = vector.shape_cast %125 : vector<128xf32> to vector<1x128xf32>
    %cst_26 = arith.constant 1.600000e+01 : f32
    %127 = vector.broadcast %cst_26 : f32 to vector<1x128xf32>
    %128 = arith.divf %126, %127 : vector<1x128xf32>
    %129 = arith.mulf %124, %124 : vector<16x128xf32>
    %cst_27 = arith.constant dense<0.000000e+00> : vector<128xf32>
    %130 = vector.multi_reduction <add>, %129, %cst_27 [0] : vector<16x128xf32> to vector<128xf32>
    %131 = vector.shape_cast %130 : vector<128xf32> to vector<1x128xf32>
    %cst_28 = arith.constant 1.600000e+01 : f32
    %132 = vector.broadcast %cst_28 : f32 to vector<1x128xf32>
    %133 = arith.divf %131, %132 : vector<1x128xf32>
    %134 = arith.mulf %128, %128 : vector<1x128xf32>
    %135 = arith.subf %133, %134 : vector<1x128xf32>
    %cst_29 = arith.constant 0.000000e+00 : f32
    %136 = vector.broadcast %cst_29 : f32 to vector<1x128xf32>
    %137 = arith.maximumf %135, %136 : vector<1x128xf32>
    %138 = vector.broadcast %128 : vector<1x128xf32> to vector<16x128xf32>
    %139 = arith.subf %124, %138 : vector<16x128xf32>
    %cst_30 = arith.constant 9.99999974E-6 : f32
    %140 = vector.broadcast %cst_30 : f32 to vector<1x128xf32>
    %141 = arith.addf %137, %140 : vector<1x128xf32>
    %142 = math.rsqrt %141 : vector<1x128xf32>
    %143 = vector.broadcast %142 : vector<1x128xf32> to vector<16x128xf32>
    %144 = arith.mulf %139, %143 : vector<16x128xf32>
    %cst_31 = arith.constant 0.000000e+00 : f32
    %145 = vector.broadcast %cst_31 : f32 to vector<16x128xf32>
    %146 = arith.maximumf %144, %145 : vector<16x128xf32>
    %147 = arith.mulf %146, %63 : vector<16x128xf32>
    %148 = arith.truncf %147 : vector<16x128xf32> to vector<16x128xbf16>
    %c0_32 = arith.constant 0 : index
    %c0_33 = arith.constant 0 : index
    %149 = vector.load %arg6[%c0_32, %c0_33] : memref<128x128xbf16, #tpu.memory_space<vmem>>, vector<128x128xbf16>
    %cst_34 = arith.constant dense<0.000000e+00> : vector<16x128xf32>
    %150 = tpu.matmul %148, %149, %cst_34 {dimension_numbers = #tpu.dot_dimension_numbers<[1], [0], [0], [1], [0, 0, 1, 1], [], []>} : vector<16x128xbf16>, vector<128x128xbf16>, vector<16x128xf32> -> vector<16x128xf32>
    %c0_35 = arith.constant 0 : index
    %c0_36 = arith.constant 0 : index
    %151 = vector.load %arg7[%c0_35, %c0_36] : memref<1x128xf32, #tpu.memory_space<vmem>>, vector<1x128xf32>
    %152 = vector.broadcast %151 : vector<1x128xf32> to vector<16x128xf32>
    %153 = arith.addf %150, %152 : vector<16x128xf32>
    %cst_37 = arith.constant dense<0.000000e+00> : vector<128xf32>
    %154 = vector.multi_reduction <add>, %153, %cst_37 [0] : vector<16x128xf32> to vector<128xf32>
    %155 = vector.shape_cast %154 : vector<128xf32> to vector<1x128xf32>
    %cst_38 = arith.constant 1.600000e+01 : f32
    %156 = vector.broadcast %cst_38 : f32 to vector<1x128xf32>
    %157 = arith.divf %155, %156 : vector<1x128xf32>
    %158 = arith.mulf %153, %153 : vector<16x128xf32>
    %cst_39 = arith.constant dense<0.000000e+00> : vector<128xf32>
    %159 = vector.multi_reduction <add>, %158, %cst_39 [0] : vector<16x128xf32> to vector<128xf32>
    %160 = vector.shape_cast %159 : vector<128xf32> to vector<1x128xf32>
    %cst_40 = arith.constant 1.600000e+01 : f32
    %161 = vector.broadcast %cst_40 : f32 to vector<1x128xf32>
    %162 = arith.divf %160, %161 : vector<1x128xf32>
    %163 = arith.mulf %157, %157 : vector<1x128xf32>
    %164 = arith.subf %162, %163 : vector<1x128xf32>
    %cst_41 = arith.constant 0.000000e+00 : f32
    %165 = vector.broadcast %cst_41 : f32 to vector<1x128xf32>
    %166 = arith.maximumf %164, %165 : vector<1x128xf32>
    %167 = vector.broadcast %157 : vector<1x128xf32> to vector<16x128xf32>
    %168 = arith.subf %153, %167 : vector<16x128xf32>
    %cst_42 = arith.constant 9.99999974E-6 : f32
    %169 = vector.broadcast %cst_42 : f32 to vector<1x128xf32>
    %170 = arith.addf %166, %169 : vector<1x128xf32>
    %171 = math.rsqrt %170 : vector<1x128xf32>
    %172 = vector.broadcast %171 : vector<1x128xf32> to vector<16x128xf32>
    %173 = arith.mulf %168, %172 : vector<16x128xf32>
    %cst_43 = arith.constant 0.000000e+00 : f32
    %174 = vector.broadcast %cst_43 : f32 to vector<16x128xf32>
    %175 = arith.maximumf %173, %174 : vector<16x128xf32>
    %176 = arith.mulf %175, %89 : vector<16x128xf32>
    %177 = arith.truncf %176 : vector<16x128xf32> to vector<16x128xbf16>
    %c0_44 = arith.constant 0 : index
    %c0_45 = arith.constant 0 : index
    %178 = vector.load %arg8[%c0_44, %c0_45] : memref<128x128xbf16, #tpu.memory_space<vmem>>, vector<128x128xbf16>
    %cst_46 = arith.constant dense<0.000000e+00> : vector<16x128xf32>
    %179 = tpu.matmul %177, %178, %cst_46 {dimension_numbers = #tpu.dot_dimension_numbers<[1], [0], [0], [1], [0, 0, 1, 1], [], []>} : vector<16x128xbf16>, vector<128x128xbf16>, vector<16x128xf32> -> vector<16x128xf32>
    %c0_47 = arith.constant 0 : index
    %c0_48 = arith.constant 0 : index
    %180 = vector.load %arg9[%c0_47, %c0_48] : memref<1x128xf32, #tpu.memory_space<vmem>>, vector<1x128xf32>
    %181 = vector.broadcast %180 : vector<1x128xf32> to vector<16x128xf32>
    %182 = arith.addf %179, %181 : vector<16x128xf32>
    %c0_49 = arith.constant 0 : index
    %c0_50 = arith.constant 0 : index
    %183 = vector.load %arg11[%c0_49, %c0_50] : memref<16x128xf32, #tpu.memory_space<vmem>>, vector<16x128xf32>
    tpu.vector_store %arg11[%c0_49, %c0_50], %182 {strides = array<i32>} : memref<16x128xf32, #tpu.memory_space<vmem>>, vector<16x128xf32>,
    return
  }
}

</mosaic_0001>

<bundles_post_ra>
// kernel: tpu_custom_call.1
= control target key start
LH: loop header
LB: loop body
LE: loop exit
PB: predicated region body
PF: predicated region fallthrough
CT: control target
= control target key end

     0   :  { %16 = vsyncpa [#allocation3], 0  ;;  %s2025_s0 = inlined_call_operand.hbm [shape: bf16[16,128], index: 0, kind: input, shape index: {}]   ;;  %s2026_s1 = inlined_call_operand.hbm [shape: f32[16,128], index: 1, kind: input, shape index: {}]   ;;  %s2027_s2 = inlined_call_operand.hbm [shape: bf16[128,128], index: 2, kind: input, shape index: {}]   ;;  %s2028_s3 = inlined_call_operand.vmem [shape: f32[1,128], index: 3, kind: input, shape index: {}]   ;;  %s2029_s4 = inlined_call_operand.hbm [shape: bf16[128,128], index: 4, kind: input, shape index: {}]   ;;  %s2030_s5 = inlined_call_operand.vmem [shape: f32[1,128], index: 5, kind: input, shape index: {}]   ;;  %s2031_s6 = inlined_call_operand.hbm [shape: bf16[128,128], index: 6, kind: input, shape index: {}]   ;;  %s2032_s7 = inlined_call_operand.vmem [shape: f32[1,128], index: 7, kind: input, shape index: {}]   ;;  %s2033_s8 = inlined_call_operand.hbm [shape: bf16[128,128], index: 8, kind: input, shape index: {}]   ;;  %s2034_s9 = inlined_call_operand.vmem [shape: f32[1,128], index: 9, kind: input, shape index: {}]   ;;  %s2035_s10 = inlined_call_operand.hbm [shape: f32[8,1920], index: 10, kind: input, shape index: {}]   ;;  %s2036_s11 = inlined_call_operand.hbm [shape: f32[16,128], index: 11, kind: output, shape index: {}]  }
   0x1   :  { %17 = vsyncpa [#allocation6], 0 }
   0x2   :  { %18 = vsyncpa [#allocation9], 0 }
   0x3   :  { %19 = vsyncpa [#allocation12], 0 }
   0x4   :  { %20 = vsyncpa [#allocation4], 0  ;;  %s1546_s17 = smov [#allocation5]   ;;  %s1360_s21 = scalar_lea.hbm %s2026_s1, 256 }
   0x5   :  { %s38_s18 = sshll.u32 %s1546_s17, 4  ;;  %p1361_p0 = scmp.ne.s32.totalorder %s2026_s1, %s1360_s21  ;;  %s39_s18 = int_to_ptr.vmem [resolvable:$true] %s38_s18 }
   0x6   :  { %p1364_p1 = scmp.lt.u32.totalorder %s1360_s21, %s2026_s1 }
   0x8   :  { %p1366_p2 = pnand %p1364_p1, %p1361_p0 }
   0xa   :  { %1369 = shalt.err (!%p1366_p2)
}
   0xb   :  { %s1370_s26 = scalar_lea.vmem %s39_s18, 256  ;;  %p1375_p4 = scmp.lt.s32.totalorder %s39_s18, %s39_s18 }
   0xc   :  { %p1371_p3 = scmp.ne.s32.totalorder %s39_s18, %s1370_s26  ;;  %p1376_p5 = scmp.lt.s32.totalorder %s1370_s26, %s1370_s26 }
   0xe   :  { %p1377_p6 = por %p1376_p5, %p1375_p4 }
  0x10   :  { %p1378_p7 = pnand %p1377_p6, %p1371_p3 }
  0x12   :  { %1381 = shalt.err (!%p1378_p7)
}
  0x13   :  { %s1547_s27 = smov 128   ;;  %s1548_s28 = smov 8  }
  0x14   :  { %44 = dma.hbm_to_vmem [thread:$0]  %s2026_s1, 256, %s39_s18, [#allocation6], %s1547_s27, %s1547_s27, %s1548_s28  }
  0x15   :  { %s1549_s12 = smov [#allocation8]   ;;  %s1550_s14 = smov [#allocation11]  }
  0x16   :  { %s64_s13 = sshll.u32 %s1549_s12, 4  ;;  %s92_s15 = sshll.u32 %s1550_s14, 4  ;;  %s65_s13 = int_to_ptr.vmem [resolvable:$true] %s64_s13  ;;  %s93_s15 = int_to_ptr.vmem [resolvable:$true] %s92_s15 }
  0x17   :  { %s1382_s19 = scalar_lea.hbm %s2029_s4, 1024 }
  0x18   :  { %p1383_p8 = scmp.ne.s32.totalorder %s2029_s4, %s1382_s19  ;;  %p1386_p9 = scmp.lt.u32.totalorder %s1382_s19, %s2029_s4 }
  0x1a   :  { %p1388_p10 = pnand %p1386_p9, %p1383_p8 }
  0x1c   :  { %1391 = shalt.err (!%p1388_p10)
}
  0x1d   :  { %s1392_s1 = scalar_lea.vmem %s65_s13, 1024  ;;  %p1397_p12 = scmp.lt.s32.totalorder %s65_s13, %s65_s13 }
  0x1e   :  { %p1393_p11 = scmp.ne.s32.totalorder %s65_s13, %s1392_s1  ;;  %p1398_p13 = scmp.lt.s32.totalorder %s1392_s1, %s1392_s1 }
  0x20   :  { %p1399_p0 = por %p1398_p13, %p1397_p12 }
  0x22   :  { %p1400_p1 = pnand %p1399_p0, %p1393_p11 }
  0x24   :  { %1403 = shalt.err (!%p1400_p1)
}
  0x25   :  { %s1551_s18 = smov 64   ;;  %s1552_s24 = smov 4  }
  0x26   :  { %70 = dma.hbm_to_vmem [thread:$0]  %s2029_s4, 1024, %s65_s13, [#allocation9], %s1551_s18, %s1551_s18, %s1552_s24  }
  0x27   :  { %s1404_s12 = scalar_lea.hbm %s2033_s8, 1024 }
  0x28   :  { %p1405_p2 = scmp.ne.s32.totalorder %s2033_s8, %s1404_s12  ;;  %p1408_p3 = scmp.lt.u32.totalorder %s1404_s12, %s2033_s8 }
  0x2a   :  { %p1410_p4 = pnand %p1408_p3, %p1405_p2 }
  0x2c   :  { %1413 = shalt.err (!%p1410_p4)
}
  0x2d   :  { %s1414_s20 = scalar_lea.vmem %s93_s15, 1024  ;;  %p1419_p6 = scmp.lt.s32.totalorder %s93_s15, %s93_s15 }
  0x2e   :  { %p1415_p5 = scmp.ne.s32.totalorder %s93_s15, %s1414_s20  ;;  %p1420_p7 = scmp.lt.s32.totalorder %s1414_s20, %s1414_s20 }
  0x30   :  { %p1421_p8 = por %p1420_p7, %p1419_p6 }
  0x32   :  { %p1422_p9 = pnand %p1421_p8, %p1415_p5 }
  0x34   :  { %1425 = shalt.err (!%p1422_p9)
}
  0x35   :  { %98 = dma.hbm_to_vmem [thread:$0]  %s2033_s8, 1024, %s93_s15, [#allocation12], %s1551_s18, %s1551_s18, %s1552_s24  }
  0x36   :  { %s1553_s21 = smov [#allocation2]   ;;  %s1554_s23 = smov [#allocation7]  }
  0x37   :  { %s26_s22 = sshll.u32 %s1553_s21, 4  ;;  %s50_s1 = sshll.u32 %s1554_s23, 4  ;;  %s27_s22 = int_to_ptr.vmem [resolvable:$true] %s26_s22  ;;  %s51_s1 = int_to_ptr.vmem [resolvable:$true] %s50_s1 }
  0x38   :  { %s1426_s29 = scalar_lea.hbm %s2025_s0, 128 }
  0x39   :  { %p1427_p10 = scmp.ne.s32.totalorder %s2025_s0, %s1426_s29  ;;  %p1430_p11 = scmp.lt.u32.totalorder %s1426_s29, %s2025_s0 }
  0x3b   :  { %p1432_p12 = pnand %p1430_p11, %p1427_p10 }
  0x3d   :  { %1435 = shalt.err (!%p1432_p12)
}
  0x3e   :  { %s1436_s8 = scalar_lea.vmem %s27_s22, 128  ;;  %p1441_p0 = scmp.lt.s32.totalorder %s27_s22, %s27_s22 }
  0x3f   :  { %p1437_p13 = scmp.ne.s32.totalorder %s27_s22, %s1436_s8  ;;  %p1442_p1 = scmp.lt.s32.totalorder %s1436_s8, %s1436_s8 }
  0x41   :  { %p1443_p2 = por %p1442_p1, %p1441_p0 }
  0x43   :  { %p1444_p3 = pnand %p1443_p2, %p1437_p13 }
  0x45   :  { %1447 = shalt.err (!%p1444_p3)
}
  0x46   :  { %32 = dma.hbm_to_vmem [thread:$0]  %s2025_s0, 128, %s27_s22, [#allocation3], %s1551_s18, %s1551_s18, %s1552_s24  }
  0x47   :  { %s1448_s4 = scalar_lea.hbm %s2027_s2, 1024 }
  0x48   :  { %p1449_p4 = scmp.ne.s32.totalorder %s2027_s2, %s1448_s4  ;;  %p1452_p5 = scmp.lt.u32.totalorder %s1448_s4, %s2027_s2 }
  0x4a   :  { %p1454_p6 = pnand %p1452_p5, %p1449_p4 }
  0x4c   :  { %1457 = shalt.err (!%p1454_p6)
}
  0x4d   :  { %s1458_s26 = scalar_lea.vmem %s51_s1, 1024  ;;  %p1463_p8 = scmp.lt.s32.totalorder %s51_s1, %s51_s1 }
  0x4e   :  { %p1459_p7 = scmp.ne.s32.totalorder %s51_s1, %s1458_s26  ;;  %p1464_p9 = scmp.lt.s32.totalorder %s1458_s26, %s1458_s26 }
  0x50   :  { %p1465_p10 = por %p1464_p9, %p1463_p8 }
  0x52   :  { %p1466_p11 = pnand %p1465_p10, %p1459_p7 }
  0x54   :  { %1469 = shalt.err (!%p1466_p11)
}
  0x55   :  { %56 = dma.hbm_to_vmem [thread:$0]  %s2027_s2, 1024, %s51_s1, [#allocation6], %s1551_s18, %s1551_s18, %s1552_s24  }
  0x56   :  { %s1555_s29 = smov [#allocation10]   ;;  %s1556_s12 = smov [#allocation13]  }
  0x57   :  { %s78_s30 = sshll.u32 %s1555_s29, 4  ;;  %s107_s14 = sshll.u32 %s1556_s12, 4  ;;  %s79_s30 = int_to_ptr.vmem [resolvable:$true] %s78_s30  ;;  %s108_s14 = int_to_ptr.vmem [resolvable:$true] %s107_s14 }
  0x58   :  { %s1470_s15 = scalar_lea.hbm %s2031_s6, 1024 }
  0x59   :  { %p1471_p12 = scmp.ne.s32.totalorder %s2031_s6, %s1470_s15  ;;  %p1474_p13 = scmp.lt.u32.totalorder %s1470_s15, %s2031_s6 }
  0x5b   :  { %p1476_p0 = pnand %p1474_p13, %p1471_p12 }
  0x5d   :  { %1479 = shalt.err (!%p1476_p0)
}
  0x5e   :  { %s1480_s2 = scalar_lea.vmem %s79_s30, 1024  ;;  %p1485_p2 = scmp.lt.s32.totalorder %s79_s30, %s79_s30 }
  0x5f   :  { %p1481_p1 = scmp.ne.s32.totalorder %s79_s30, %s1480_s2  ;;  %p1486_p3 = scmp.lt.s32.totalorder %s1480_s2, %s1480_s2 }
  0x61   :  { %p1487_p4 = por %p1486_p3, %p1485_p2 }
  0x63   :  { %p1488_p5 = pnand %p1487_p4, %p1481_p1 }
  0x65   :  { %1491 = shalt.err (!%p1488_p5)
}
  0x66   :  { %84 = dma.hbm_to_vmem [thread:$0]  %s2031_s6, 1024, %s79_s30, [#allocation9], %s1551_s18, %s1551_s18, %s1552_s24  }
  0x67   :  { %s1492_s25 = scalar_lea.hbm %s2035_s10, 1920 }
  0x68   :  { %p1493_p6 = scmp.ne.s32.totalorder %s2035_s10, %s1492_s25  ;;  %p1496_p7 = scmp.lt.u32.totalorder %s1492_s25, %s2035_s10 }
  0x6a   :  { %p1498_p8 = pnand %p1496_p7, %p1493_p6 }
  0x6c   :  { %1501 = shalt.err (!%p1498_p8)
}
  0x6d   :  { %s1502_s12 = scalar_lea.vmem %s108_s14, 1920  ;;  %p1507_p10 = scmp.lt.s32.totalorder %s108_s14, %s108_s14 }
  0x6e   :  { %p1503_p9 = scmp.ne.s32.totalorder %s108_s14, %s1502_s12  ;;  %p1508_p11 = scmp.lt.s32.totalorder %s1502_s12, %s1502_s12 }
  0x70   :  { %p1509_p12 = por %p1508_p11, %p1507_p10 }
  0x72   :  { %p1510_p13 = pnand %p1509_p12, %p1503_p9 }
  0x74   :  { %1513 = shalt.err (!%p1510_p13)
}
  0x75   :  { %110 = dma.hbm_to_vmem [thread:$0]  %s2035_s10, 1920, %s108_s14, [#allocation12]  }
  0x76   :  { %1536 = dma.done.wait [#allocation3], 128  }
  0x77   :  { %1537 = vsyncadd [#allocation3], 4294967168 }
  0x78   :  { %1538 = dma.done.wait [#allocation6], 1280  }
  0x79   :  { %1539 = vsyncadd [#allocation6], 4294966016 }
  0x7a   :  { %1540 = dma.done.wait [#allocation9], 2048  }
  0x7b   :  { %1541 = vsyncadd [#allocation9], 4294965248 }
  0x7c   :  { %1542 = dma.done.wait [#allocation12], 2944  }
  0x7d   :  { %1543 = vsyncadd [#allocation12], 4294964352  ;;  %v1557_v0 = vmov 0.0   ;;  %vm1558_vm0 = vmmov 0   ;;  %v1559_v1 = vmov 1   ;;  %v1560_v2 = vmov 0  }
  0x7e   :  { %1198 = vmatprep.subr.bf16.mxu0 %v1557_v0  ;;  %1214 = vmatprep.mubr.msk.bf16.mxu0 %vm1558_vm0, %v1557_v0  ;;  %v1297_v3 = vld [vmem:[#allocation7] sm:$0xff]   ;;  %v1298_v4 = vld [vmem:[#allocation7 + $0x8] sm:$0xff]   ;;  %v1299_v5 = vld [vmem:[#allocation7 + $0x10] sm:$0xff]   ;;  %v154_v14 = vlaneseq  ;;  %s1561_s8 = smov [#allocation14]  }
  0x7f   :  { %1295 = vset.pattern.permute.xlu1 %v1559_v1  ;;  %1294 = vset.pattern.permute.xlu0 %v1560_v2  ;;  %v1300_v6 = vld [vmem:[#allocation7 + $0x18] sm:$0xff]   ;;  %v133_v7 = vld [vmem:[#allocation5] sm:$0xff]  ;;  %v1301_v9 = vld [vmem:[#allocation7 + $0x20] sm:$0xff]   ;;  %s1104_s15 = sshll.u32 %s1561_s8, 4  ;;  %s1105_s15 = int_to_ptr.vmem [resolvable:$true] %s1104_s15 }
  0x80   :  { %1218 = vmatprep.subr.bf16.mxu1 %v1557_v0  ;;  %1234 = vmatprep.mubr.msk.bf16.mxu1 %vm1558_vm0, %v1557_v0  ;;  %v134_v8 = vld [vmem:[#allocation5 + $0x8] sm:$0xff]  ;;  %v1302_v10 = vld [vmem:[#allocation7 + $0x28] sm:$0xff]   ;;  %v1303_v11 = vld [vmem:[#allocation7 + $0x30] sm:$0xff]   ;;  %v155_v15 = vshrl.u32 %v154_v14, 7  ;;  %s1514_s17 = scalar_lea.vmem %s1105_s15, 256  ;;  %p1519_p1 = scmp.lt.s32.totalorder %s1105_s15, %s1105_s15 }
  0x81   :  { %1199 = vmatpush3.bf16.msra.mxu0 %v1297_v3  ;;  %268 = vperm.xlu1 %1295, %v133_v7   ;;  %v1304_v12 = vld [vmem:[#allocation7 + $0x38] sm:$0xff]   ;;  %v1305_v13 = vld [vmem:[#allocation2] sm:$0xff]   ;;  %v1306_v50 = vld [vmem:[#allocation8] sm:$0xff]   ;;  %p1515_p0 = scmp.ne.s32.totalorder %s1105_s15, %s1514_s17  ;;  %p1520_p2 = scmp.lt.s32.totalorder %s1514_s17, %s1514_s17 }
  0x82   :  { %1200 = vmatprep.subr.bf16.mxu0 %v1557_v0  ;;  %144 = vperm.xlu0 %1294, %v133_v7   ;;  %v135_v16 = vld [vmem:[#allocation13] ss:$8 sm:$0xf]  ;;  %v1742_v19 = vsub.s32 2, %v155_v15  ;;  %v1744_v21 = vsub.s32 3, %v155_v15  ;;  %v176_v23 = vsub.s32 5, %v155_v15 }
  0x83   :  { %v136_v17 = vld [vmem:[#allocation13] ss:$8 sm:$0xf0]  ;;  %v260_v20 = vld [vmem:[#allocation13 + $0x1] ss:$8 sm:$0xf]  ;;  %1219 = vmatpush3.bf16.msra.mxu1 %v1306_v50  ;;  %p1521_p3 = por %p1520_p2, %p1519_p1 }
  0x84   :  { %v1740_v18 = vor.u32 %v136_v17, %v135_v16  ;;  %v261_v22 = vld [vmem:[#allocation13 + $0x1] ss:$8 sm:$0xf0]  ;;  %v180_v24 = vsub.s32 6, %v155_v15  ;;  %v1750_v33 = vsub.s32 4, %v155_v15  ;;  %v184_v34 = vsub.s32 7, %v155_v15  ;;  %1220 = vmatprep.subr.bf16.mxu1 %v1557_v0 }
  0x85   :  { %1201 = vmatpush3.bf16.msra.mxu0 %v1298_v4  ;;  %272 = vperm.xlu1 %1295, %v134_v8   ;;  %v1746_v25 = vor.u32 %v261_v22, %v260_v20  ;;  %v139_v26 = vld [vmem:[#allocation13 + $0x40] ss:$8 sm:$0xf]  ;;  %v264_v31 = vld [vmem:[#allocation13 + $0x41] ss:$8 sm:$0xf]  ;;  %p1522_p4 = pnand %p1521_p3, %p1515_p0 }
  0x86   :  { %1202 = vmatprep.subr.bf16.mxu0 %v1557_v0  ;;  %149 = vperm.xlu0 %1294, %v134_v8   ;;  %v140_v27 = vld [vmem:[#allocation13 + $0x40] ss:$8 sm:$0xf0]  ;;  %v177_v29 = vrot.slane %v1740_v18, %v176_v23  ;;  %v181_v30 = vrot.slane %v1740_v18, %v180_v24  ;;  %v265_v32 = vld [vmem:[#allocation13 + $0x41] ss:$8 sm:$0xf0]  ;;  %v185_v39 = vrot.slane %v1740_v18, %v184_v34 }
  0x87   :  { %v141_v28 = vor.u32 %v140_v27, %v139_v26  ;;  %v266_v35 = vor.u32 %v265_v32, %v264_v31  ;;  %v300_v36 = vrot.slane %v1746_v25, %v176_v23  ;;  %v304_v37 = vrot.slane %v1746_v25, %v180_v24  ;;  %v1307_v51 = vld [vmem:[#allocation8 + $0x8] sm:$0xff]   ;;  %v1308_v53 = vld [vmem:[#allocation8 + $0x10] sm:$0xff]   ;;  %v1309_v57 = vld [vmem:[#allocation8 + $0x18] sm:$0xff]  }
  0x88   :  { %v308_v40 = vrot.slane %v1746_v25, %v184_v34  ;;  %1221 = vmatpush3.bf16.msra.mxu1 %v1307_v51  ;;  %v1788_v56 = vsub.s32 0, %v155_v15  ;;  %v1791_v58 = vsub.s32 1, %v155_v15  ;;  %v1310_v63 = vld [vmem:[#allocation8 + $0x20] sm:$0xff]   ;;  %v1313_v34 = vld [vmem:[#allocation8 + $0x38] sm:$0xff]  }
  0x89   :  { %1203 = vmatpush3.bf16.msra.mxu0 %v1299_v5  ;;  %v1755_v38 = vrot.slane %v141_v28, %v1742_v19  ;;  %v1760_v41 = vrot.slane %v141_v28, %v1744_v21  ;;  %v1763_v42 = vrot.slane %v141_v28, %v1750_v33  ;;  %v1766_v43 = vrot.slane %v266_v35, %v1742_v19 }
  0x8a   :  { %1204 = vmatprep.subr.bf16.mxu0 %v1557_v0  ;;  %1296 = vset.pattern.permute.xlu0 %v1559_v1  ;;  %v1769_v44 = vrot.slane %v266_v35, %v1744_v21  ;;  %v1772_v45 = vrot.slane %v266_v35, %v1750_v33  ;;  %v1774_v46 = vrot.slane %v141_v28, %v176_v23 }
  0x8b   :  { %v1776_v47 = vrot.slane %v266_v35, %v176_v23  ;;  %v1778_v48 = vrot.slane %v141_v28, %v180_v24  ;;  %v1780_v49 = vrot.slane %v266_v35, %v180_v24  ;;  %1222 = vmatprep.subr.bf16.mxu1 %v1557_v0  ;;  %v189_v59 = vrot.slane %v141_v28, %v1788_v56  ;;  %v1312_v23 = vld [vmem:[#allocation8 + $0x30] sm:$0xff]  }
  0x8c   :  { %1223 = vmatpush3.bf16.msra.mxu1 %v1308_v53  ;;  %v193_v61 = vrot.slane %v141_v28, %v1791_v58  ;;  %v312_v4 = vrot.slane %v266_v35, %v1788_v56  ;;  %v316_v5 = vrot.slane %v266_v35, %v1791_v58 }
  0x8d   :  { %1205 = vmatpush3.bf16.msra.mxu0 %v1300_v6  ;;  %1224 = vmatprep.subr.bf16.mxu1 %v1557_v0 }
  0x8e   :  { %1206 = vmatprep.subr.bf16.mxu0 %v1557_v0 }
  0x90   :  { %1225 = vmatpush3.bf16.msra.mxu1 %v1309_v57 }
  0x91   :  { %1207 = vmatpush3.bf16.msra.mxu0 %v1301_v9  ;;  %1226 = vmatprep.subr.bf16.mxu1 %v1557_v0  ;;  %v1311_v9 = vld [vmem:[#allocation8 + $0x28] sm:$0xff]  }
  0x92   :  { %1208 = vmatprep.subr.bf16.mxu0 %v1557_v0 }
  0x94   :  { %1227 = vmatpush3.bf16.msra.mxu1 %v1310_v63 }
  0x95   :  { %1209 = vmatpush3.bf16.msra.mxu0 %v1302_v10  ;;  %1228 = vmatprep.subr.bf16.mxu1 %v1557_v0 }
  0x96   :  { %1210 = vmatprep.subr.bf16.mxu0 %v1557_v0 }
  0x98   :  { %1229 = vmatpush3.bf16.msra.mxu1 %v1311_v9 }
  0x99   :  { %1211 = vmatpush3.bf16.msra.mxu0 %v1303_v11  ;;  %1230 = vmatprep.subr.bf16.mxu1 %v1557_v0 }
  0x9a   :  { %1212 = vmatprep.subr.bf16.mxu0 %v1557_v0 }
  0x9c   :  { %1231 = vmatpush3.bf16.msra.mxu1 %v1312_v23 }
  0x9d   :  { %1213 = vmatpush3.bf16.msra.mxu0 %v1304_v12  ;;  %1232 = vmatprep.subr.bf16.mxu1 %v1557_v0 }
  0x9e   :  { %1238 = vmatprep.subr.bf16.mxu0 %v1557_v0 }
  0xa0   :  { %1215 = vmatmul.mubr.bf16.vlgmr.msra.gmra.mrb[0].mxu0 %v1305_v13  ;;  %1233 = vmatpush3.bf16.msra.mxu1 %v1313_v34 }
  0xa1   :  { %1254 = vmatprep.mubr.msk.bf16.mxu0 %vm1558_vm0, %v1557_v0  ;;  %1258 = vmatprep.subr.bf16.mxu1 %v1557_v0 }
 0x100   :  { %v1794_v60 = vpop.permute.xlu1 %268 }
 0x101   :  { %v1784_v52 = vpop.permute.xlu0 %144  ;;  %v357_v13 = vmul.f32 %v300_v36, %v1794_v60  ;;  %v358_v14 = vmul.f32 %v304_v37, %v1794_v60  ;;  %v359_v15 = vmul.f32 %v308_v40, %v1794_v60  ;;  %v360_v16 = vmul.f32 %v312_v4, %v1794_v60 }
 0x102   :  { %v234_v54 = vmul.f32 %v177_v29, %v1784_v52  ;;  %v235_v55 = vmul.f32 %v181_v30, %v1784_v52  ;;  %v236_v1 = vmul.f32 %v185_v39, %v1784_v52  ;;  %v237_v2 = vmul.f32 %v189_v59, %v1784_v52 }
 0x103   :  { %v238_v3 = vmul.f32 %v193_v61, %v1784_v52  ;;  %v361_v17 = vmul.f32 %v316_v5, %v1794_v60  ;;  %v241_v9 = vmul.f32 %v1763_v42, %v1784_v52 }
 0x104   :  { %v1808_v8 = vpop.permute.xlu1 %272  ;;  %v387_v28 = vadd.f32 %v357_v13, %v234_v54  ;;  %v390_v31 = vadd.f32 %v360_v16, %v237_v2 }
 0x105   :  { %v1798_v62 = vpop.permute.xlu0 %149  ;;  %v372_v20 = vmul.f32 %v300_v36, %v1808_v8  ;;  %v373_v22 = vmul.f32 %v304_v37, %v1808_v8  ;;  %v374_v24 = vmul.f32 %v308_v40, %v1808_v8  ;;  %v375_v26 = vmul.f32 %v312_v4, %v1808_v8 }
 0x106   :  { %v249_v6 = vmul.f32 %v177_v29, %v1798_v62  ;;  %v250_v7 = vmul.f32 %v181_v30, %v1798_v62  ;;  %v251_v10 = vmul.f32 %v185_v39, %v1798_v62  ;;  %v252_v11 = vmul.f32 %v189_v59, %v1798_v62 }
 0x107   :  { %v253_v12 = vmul.f32 %v193_v61, %v1798_v62  ;;  %v376_v27 = vmul.f32 %v316_v5, %v1808_v8  ;;  %v388_v29 = vadd.f32 %v358_v14, %v235_v55  ;;  %v389_v30 = vadd.f32 %v359_v15, %v236_v1 }
 0x108   :  { %v1824_v32 = vadd.f32 %v361_v17, %v238_v3  ;;  %v402_v35 = vadd.f32 %v372_v20, %v249_v6  ;;  %v403_v36 = vadd.f32 %v373_v22, %v250_v7  ;;  %v404_v37 = vadd.f32 %v374_v24, %v251_v10 }
 0x109   :  { %v405_v39 = vadd.f32 %v375_v26, %v252_v11  ;;  %v1827_v50 = vadd.f32 %v376_v27, %v253_v12  ;;  %v456_v40 = vand.u32 2147483647, %v388_v29  ;;  %v458_v53 = vand.u32 2147483647, %v387_v28 }
 0x10a   :  { %v457_v51 = vand.u32 2147483647, %v403_v36  ;;  %v459_v54 = vand.u32 2147483647, %v402_v35  ;;  %v464_v55 = vand.u32 2147483647, %v389_v30  ;;  %v239_v6 = vmul.f32 %v1755_v38, %v1784_v52 }
 0x10b   :  { %vm460_vm1 = vcmp.gt.f32.partialorder %v456_v40, %v458_v53  ;;  %v465_v59 = vand.u32 2147483647, %v404_v37  ;;  %v472_v1 = vand.u32 2147483647, %v390_v31  ;;  %v473_v2 = vand.u32 2147483647, %v405_v39 }
 0x10c   :  { %vm461_vm2 = vcmp.gt.f32.partialorder %v457_v51, %v459_v54  ;;  %v462_v57 = vsel %vm460_vm1, %v388_v29, %v387_v28  ;;  %v480_v4 = vand.u32 2147483647, %v1824_v32  ;;  %v481_v5 = vand.u32 2147483647, %v1827_v50 }
 0x10d   :  { %v463_v61 = vsel %vm461_vm2, %v403_v36, %v402_v35  ;;  %v466_v63 = vand.u32 2147483647, %v462_v57  ;;  %v240_v7 = vmul.f32 %v1760_v41, %v1784_v52  ;;  %v242_v11 = vmul.f32 %v1774_v46, %v1784_v52 }
 0x10e   :  { %v467_v3 = vand.u32 2147483647, %v463_v61  ;;  %v243_v12 = vmul.f32 %v1778_v48, %v1784_v52  ;;  %v254_v15 = vmul.f32 %v1755_v38, %v1798_v62  ;;  %v255_v16 = vmul.f32 %v1760_v41, %v1798_v62 }
 0x10f   :  { %vm468_vm3 = vcmp.gt.f32.partialorder %v464_v55, %v466_v63  ;;  %v256_v20 = vmul.f32 %v1763_v42, %v1798_v62  ;;  %v257_v22 = vmul.f32 %v1774_v46, %v1798_v62  ;;  %v258_v23 = vmul.f32 %v1778_v48, %v1798_v62 }
 0x110   :  { %vm469_vm4 = vcmp.gt.f32.partialorder %v465_v59, %v467_v3  ;;  %v470_v10 = vsel %vm468_vm3, %v389_v30, %v462_v57  ;;  %v362_v24 = vmul.f32 %v1766_v43, %v1794_v60  ;;  %v363_v38 = vmul.f32 %v1769_v44, %v1794_v60 }
 0x111   :  { %v471_v13 = vsel %vm469_vm4, %v404_v37, %v463_v61  ;;  %v474_v14 = vand.u32 2147483647, %v470_v10  ;;  %v364_v41 = vmul.f32 %v1772_v45, %v1794_v60  ;;  %v365_v42 = vmul.f32 %v1776_v47, %v1794_v60 }
 0x112   :  { %v475_v17 = vand.u32 2147483647, %v471_v13  ;;  %v366_v46 = vmul.f32 %v1780_v49, %v1794_v60  ;;  %v377_v28 = vmul.f32 %v1766_v43, %v1808_v8  ;;  %v378_v29 = vmul.f32 %v1769_v44, %v1808_v8 }
 0x113   :  { %vm476_vm5 = vcmp.gt.f32.partialorder %v472_v1, %v474_v14  ;;  %v380_v34 = vmul.f32 %v1776_v47, %v1808_v8  ;;  %v381_v35 = vmul.f32 %v1780_v49, %v1808_v8  ;;  %v392_v37 = vadd.f32 %v362_v24, %v239_v6 }
 0x114   :  { %vm477_vm6 = vcmp.gt.f32.partialorder %v473_v2, %v475_v17  ;;  %v1858_v26 = vsel %vm476_vm5, %v390_v31, %v470_v10  ;;  %v379_v31 = vmul.f32 %v1772_v45, %v1808_v8  ;;  %v393_v43 = vadd.f32 %v363_v38, %v240_v7 }
 0x115   :  { %v1864_v48 = vsel %vm477_vm6, %v405_v39, %v471_v13  ;;  %v482_v27 = vand.u32 2147483647, %v1858_v26  ;;  %v394_v39 = vadd.f32 %v364_v41, %v241_v9  ;;  %v395_v47 = vadd.f32 %v365_v42, %v242_v11 }
 0x116   :  { %v483_v30 = vand.u32 2147483647, %v1864_v48  ;;  %v1894_v40 = vadd.f32 %v366_v46, %v243_v12  ;;  %v407_v51 = vadd.f32 %v377_v28, %v254_v15  ;;  %v408_v53 = vadd.f32 %v378_v29, %v255_v16 }
 0x117   :  { %vm1878_vm7 = vcmp.gt.f32.partialorder %v480_v4, %v482_v27  ;;  %v409_v54 = vadd.f32 %v379_v31, %v256_v20  ;;  %v410_v55 = vadd.f32 %v380_v34, %v257_v22  ;;  %v1896_v57 = vadd.f32 %v381_v35, %v258_v23 }
 0x118   :  { %vm1882_vm8 = vcmp.gt.f32.partialorder %v481_v5, %v483_v30  ;;  %v486_v45 = vsel %vm1878_vm7, %v1824_v32, %v1858_v26  ;;  %v500_v59 = vand.u32 2147483647, %v393_v43  ;;  %v501_v61 = vand.u32 2147483647, %v408_v53 }
 0x119   :  { %v487_v49 = vsel %vm1882_vm8, %v1827_v50, %v1864_v48  ;;  %v502_v63 = vand.u32 2147483647, %v392_v37  ;;  %v503_v1 = vand.u32 2147483647, %v407_v51  ;;  %v508_v2 = vand.u32 2147483647, %v394_v39 }
 0x11a   :  { %v509_v4 = vand.u32 2147483647, %v409_v54  ;;  %v516_v9 = vand.u32 2147483647, %v395_v47  ;;  %v517_v11 = vand.u32 2147483647, %v410_v55  ;;  %v157_v46 = vrot.slane %v1740_v18, %v1788_v56 }
 0x11b   :  { %vm504_vm9 = vcmp.gt.f32.partialorder %v500_v59, %v502_v63  ;;  %vm505_vm10 = vcmp.gt.f32.partialorder %v501_v61, %v503_v1  ;;  %v524_v15 = vand.u32 2147483647, %v1894_v40  ;;  %v525_v17 = vand.u32 2147483647, %v1896_v57 }
 0x11c   :  { %v506_v3 = vsel %vm504_vm9, %v393_v43, %v392_v37  ;;  %v507_v5 = vsel %vm505_vm10, %v408_v53, %v407_v51  ;;  %v161_v27 = vrot.slane %v1740_v18, %v1791_v58  ;;  %v280_v28 = vrot.slane %v1746_v25, %v1788_v56 }
 0x11d   :  { %v510_v6 = vand.u32 2147483647, %v506_v3  ;;  %v511_v7 = vand.u32 2147483647, %v507_v5  ;;  %v284_v29 = vrot.slane %v1746_v25, %v1791_v58  ;;  %v229_v30 = vmul.f32 %v157_v46, %v1784_v52 }
 0x11e   :  { %v230_v31 = vmul.f32 %v161_v27, %v1784_v52  ;;  %v352_v34 = vmul.f32 %v280_v28, %v1794_v60  ;;  %v244_v37 = vmul.f32 %v157_v46, %v1798_v62  ;;  %v245_v43 = vmul.f32 %v161_v27, %v1798_v62 }
 0x11f   :  { %vm512_vm11 = vcmp.gt.f32.partialorder %v508_v2, %v510_v6  ;;  %vm513_vm12 = vcmp.gt.f32.partialorder %v509_v4, %v511_v7  ;;  %v353_v35 = vmul.f32 %v284_v29, %v1794_v60 }
 0x120   :  { %v514_v10 = vsel %vm512_vm11, %v394_v39, %v506_v3  ;;  %v515_v12 = vsel %vm513_vm12, %v409_v54, %v507_v5  ;;  %v367_v39 = vmul.f32 %v280_v28, %v1808_v8  ;;  %v382_v56 = vadd.f32 %v352_v34, %v229_v30 }
 0x121   :  { %v518_v13 = vand.u32 2147483647, %v514_v10  ;;  %v519_v14 = vand.u32 2147483647, %v515_v12  ;;  %v383_v51 = vadd.f32 %v353_v35, %v230_v31  ;;  %v165_v54 = vrot.slane %v1740_v18, %v1742_v19 }
 0x122   :  { %v397_v53 = vadd.f32 %v367_v39, %v244_v37  ;;  %v414_v61 = vand.u32 2147483647, %v382_v56  ;;  %v296_v30 = vrot.slane %v1746_v25, %v1750_v33 }
 0x123   :  { %vm520_vm13 = vcmp.gt.f32.partialorder %v516_v9, %v518_v13  ;;  %vm521_vm14 = vcmp.gt.f32.partialorder %v517_v11, %v519_v14  ;;  %v412_v59 = vand.u32 2147483647, %v383_v51  ;;  %v231_v2 = vmul.f32 %v165_v54, %v1784_v52 }
 0x124   :  { %v1899_v16 = vsel %vm520_vm13, %v395_v47, %v514_v10  ;;  %v1902_v20 = vsel %vm521_vm14, %v410_v55, %v515_v12  ;;  %v368_v47 = vmul.f32 %v284_v29, %v1808_v8  ;;  %v288_v55 = vrot.slane %v1746_v25, %v1742_v19 }
 0x125   :  { %v526_v22 = vand.u32 2147483647, %v1899_v16  ;;  %v527_v23 = vand.u32 2147483647, %v1902_v20  ;;  %v415_v1 = vand.u32 2147483647, %v397_v53  ;;  %v246_v4 = vmul.f32 %v165_v54, %v1798_v62 }
 0x126   :  { %v398_v58 = vadd.f32 %v368_v47, %v245_v43  ;;  %v354_v3 = vmul.f32 %v288_v55, %v1794_v60  ;;  %v369_v5 = vmul.f32 %v288_v55, %v1808_v8  ;;  %vm416_vm2 = vcmp.gt.f32.partialorder %v412_v59, %v414_v61 }
 0x127   :  { %vm1906_vm15 = vcmp.gt.f32.partialorder %v524_v15, %v526_v22  ;;  %vm1910_vm1 = vcmp.gt.f32.partialorder %v525_v17, %v527_v23  ;;  %v418_v9 = vsel %vm416_vm2, %v383_v51, %v382_v56  ;;  %v169_v19 = vrot.slane %v1740_v18, %v1744_v21 }
 0x128   :  { %v530_v41 = vsel %vm1906_vm15, %v1894_v40, %v1899_v16  ;;  %v531_v42 = vsel %vm1910_vm1, %v1896_v57, %v1902_v20  ;;  %v413_v63 = vand.u32 2147483647, %v398_v58  ;;  %v384_v6 = vadd.f32 %v354_v3, %v231_v2 }
 0x129   :  { %v399_v7 = vadd.f32 %v369_v5, %v246_v4  ;;  %v292_v10 = vrot.slane %v1746_v25, %v1744_v21  ;;  %v422_v13 = vand.u32 2147483647, %v418_v9  ;;  %v232_v17 = vmul.f32 %v169_v19, %v1784_v52 }
 0x12a   :  { %vm417_vm3 = vcmp.gt.f32.partialorder %v413_v63, %v415_v1  ;;  %v420_v12 = vand.u32 2147483647, %v384_v6  ;;  %v247_v23 = vmul.f32 %v169_v19, %v1798_v62  ;;  %v173_v21 = vrot.slane %v1740_v18, %v1750_v33  ;;  %v1125_v18 = vld [vmem:[%s2028_s3] ss:$0 sm:$0xff] }
 0x12b   :  { %v419_v11 = vsel %vm417_vm3, %v398_v58, %v397_v53  ;;  %v421_v14 = vand.u32 2147483647, %v399_v7  ;;  %v355_v22 = vmul.f32 %v292_v10, %v1794_v60  ;;  %v370_v46 = vmul.f32 %v292_v10, %v1808_v8 }
 0x12c   :  { %v423_v15 = vand.u32 2147483647, %v419_v11  ;;  %vm424_vm4 = vcmp.gt.f32.partialorder %v420_v12, %v422_v13  ;;  %v233_v39 = vmul.f32 %v173_v21, %v1784_v52  ;;  %v356_v47 = vmul.f32 %v296_v30, %v1794_v60 }
 0x12d   :  { %v385_v27 = vadd.f32 %v355_v22, %v232_v17  ;;  %v400_v28 = vadd.f32 %v370_v46, %v247_v23  ;;  %v426_v29 = vsel %vm424_vm4, %v384_v6, %v418_v9  ;;  %v248_v56 = vmul.f32 %v173_v21, %v1798_v62 }
 0x12e   :  { %vm425_vm5 = vcmp.gt.f32.partialorder %v421_v14, %v423_v15  ;;  %v430_v35 = vand.u32 2147483647, %v426_v29  ;;  %v371_v51 = vmul.f32 %v296_v30, %v1808_v8  ;;  %v386_v53 = vadd.f32 %v356_v47, %v233_v39 }
 0x12f   :  { %v427_v31 = vsel %vm425_vm5, %v399_v7, %v419_v11  ;;  %v428_v34 = vand.u32 2147483647, %v385_v27  ;;  %v429_v37 = vand.u32 2147483647, %v400_v28 }
 0x130   :  { %v431_v43 = vand.u32 2147483647, %v427_v31  ;;  %v401_v25 = vadd.f32 %v371_v51, %v248_v56  ;;  %v436_v52 = vand.u32 2147483647, %v386_v53 }
 0x131   :  { %vm432_vm6 = vcmp.gt.f32.partialorder %v428_v34, %v430_v35 }
 0x132   :  { %vm433_vm9 = vcmp.gt.f32.partialorder %v429_v37, %v431_v43  ;;  %v434_v33 = vsel %vm432_vm6, %v385_v27, %v426_v29  ;;  %v437_v63 = vand.u32 2147483647, %v401_v25 }
 0x133   :  { %v435_v58 = vsel %vm433_vm9, %v400_v28, %v427_v31  ;;  %v438_v61 = vand.u32 2147483647, %v434_v33 }
 0x134   :  { %v439_v62 = vand.u32 2147483647, %v435_v58 }
 0x135   :  { %vm440_vm10 = vcmp.gt.f32.partialorder %v436_v52, %v438_v61 }
 0x136   :  { %vm441_vm11 = vcmp.gt.f32.partialorder %v437_v63, %v439_v62  ;;  %v442_v7 = vsel %vm440_vm10, %v386_v53, %v434_v33  ;;  %v1315_v63 = vld [vmem:[#allocation10 + $0x8] sm:$0xff]   ;;  %v1316_v62 = vld [vmem:[#allocation10 + $0x10] sm:$0xff]  }
 0x137   :  { %v443_v10 = vsel %vm441_vm11, %v401_v25, %v435_v58  ;;  %v1119_v13 = vmul.f32 -1.442695, %v442_v7 }
 0x138   :  { %v1120_v14 = vmul.f32 -1.442695, %v443_v10 }
 0x139   :  { %1330 = vpow2.f32 %v1119_v13 }
 0x13a   :  { %1332 = vpow2.f32 %v1120_v14 }
 0x143   :  { %v1331_v37 = vpop.eup %1330 }
 0x144   :  { %v1333_v39 = vpop.eup %1332  ;;  %v450_v56 = vadd.f32 1.0, %v1331_v37 }
 0x145   :  { %v451_v51 = vadd.f32 1.0, %v1333_v39 }
 0x173   :  { %v657_v54 = vpop.f32.mrb[0].mxu0 }
 0x174   :  { %v658_v55 = vadd.f32 %v1125_v18, %v657_v54  ;;  %v1216_v59 = vpop.f32.mrb[1].mxu0 }
 0x175   :  { %v660_v60 = vpop.f32.mrb[2].mxu0 }
 0x176   :  { %v661_v1 = vadd.f32 %v1125_v18, %v660_v60  ;;  %v1217_v8 = vpop.f32.mrb[3].mxu0  ;;  %v673_v2 = vmul.f32 %v658_v55, %v658_v55  ;;  %v1314_v60 = vld [vmem:[#allocation10] sm:$0xff]  }
 0x177   :  { %1239 = vmatpush3.bf16.msra.mxu0 %v1314_v60  ;;  %v1318_v8 = vld [vmem:[#allocation10 + $0x20] sm:$0xff]  }
 0x178   :  { %v664_v3 = vadd.f32 %v661_v1, %v658_v55  ;;  %v674_v4 = vmul.f32 %v661_v1, %v661_v1  ;;  %1240 = vmatprep.subr.bf16.mxu0 %v1557_v0  ;;  %v1322_v60 = vld [vmem:[#allocation11] sm:$0xff]  }
 0x17a   :  { %v665_v5 = vrot.slane %v664_v3, 4  ;;  %v675_v6 = vadd.f32 %v674_v4, %v673_v2  ;;  %v1319_v2 = vld [vmem:[#allocation10 + $0x28] sm:$0xff]   ;;  %v1321_v4 = vld [vmem:[#allocation10 + $0x38] sm:$0xff]  }
 0x17b   :  { %1241 = vmatpush3.bf16.msra.mxu0 %v1315_v63  ;;  %v1323_v63 = vld [vmem:[#allocation11 + $0x8] sm:$0xff]  }
 0x17c   :  { %v666_v9 = vadd.f32 %v665_v5, %v664_v3  ;;  %v676_v19 = vrot.slane %v675_v6, 4  ;;  %1242 = vmatprep.subr.bf16.mxu0 %v1557_v0  ;;  %v1320_v3 = vld [vmem:[#allocation10 + $0x30] sm:$0xff]   ;;  %v1135_v5 = vld [vmem:[%s2030_s5] ss:$0 sm:$0xff] }
 0x17e   :  { %v667_v11 = vrot.slane %v666_v9, 2  ;;  %v677_v12 = vadd.f32 %v676_v19, %v675_v6 }
 0x17f   :  { %1243 = vmatpush3.bf16.msra.mxu0 %v1316_v62  ;;  %v1324_v62 = vld [vmem:[#allocation11 + $0x10] sm:$0xff]  }
 0x180   :  { %v668_v15 = vadd.f32 %v667_v11, %v666_v9  ;;  %v678_v17 = vrot.slane %v677_v12, 2  ;;  %1244 = vmatprep.subr.bf16.mxu0 %v1557_v0 }
 0x182   :  { %v669_v22 = vrot.slane %v668_v15, 1  ;;  %v679_v23 = vadd.f32 %v678_v17, %v677_v12 }
 0x184   :  { %v670_v46 = vadd.f32 %v669_v22, %v668_v15  ;;  %v680_v27 = vrot.slane %v679_v23, 1 }
 0x186   :  { %v672_v28 = vmul.f32 0.0625, %v670_v46  ;;  %v681_v29 = vadd.f32 %v680_v27, %v679_v23 }
 0x188   :  { %v682_v21 = vmul.f32 0.0625, %v681_v29  ;;  %v683_v30 = vmul.f32 %v672_v28, %v672_v28  ;;  %v687_v31 = vsub.f32 %v661_v1, %v672_v28  ;;  %v686_v34 = vsub.f32 %v658_v55, %v672_v28  ;;  %v1317_v1 = vld [vmem:[#allocation10 + $0x18] sm:$0xff]  }
 0x189   :  { %1245 = vmatpush3.bf16.msra.mxu0 %v1317_v1  ;;  %v1121_v28 = vmul.f32 -1.442695, %v486_v45  ;;  %v1122_v29 = vmul.f32 -1.442695, %v487_v49  ;;  %v1325_v1 = vld [vmem:[#allocation11 + $0x18] sm:$0xff]  }
 0x18a   :  { %v684_v35 = vsub.f32 %v682_v21, %v683_v30  ;;  %1246 = vmatprep.subr.bf16.mxu0 %v1557_v0 }
 0x18c   :  { %v685_v43 = vmax.f32 %v684_v35, 0.0 }
 0x18d   :  { %1247 = vmatpush3.bf16.msra.mxu0 %v1318_v8  ;;  %v1326_v8 = vld [vmem:[#allocation11 + $0x20] sm:$0xff]  }
 0x18e   :  { %v688_v47 = vadd.f32 1e-05, %v685_v43  ;;  %1248 = vmatprep.subr.bf16.mxu0 %v1557_v0 }
 0x190   :  { %1334 = vrsqrt.f32 %v688_v47 }
 0x191   :  { %1336 = vrcp.f32 %v450_v56  ;;  %1249 = vmatpush3.bf16.msra.mxu0 %v1319_v2  ;;  %v1327_v2 = vld [vmem:[#allocation11 + $0x28] sm:$0xff]  }
 0x192   :  { %1338 = vrcp.f32 %v451_v51  ;;  %1250 = vmatprep.subr.bf16.mxu0 %v1557_v0 }
 0x193   :  { %1340 = vpow2.f32 %v1121_v28  ;;  %v1124_v28 = vmul.f32 -1.442695, %v531_v42 }
 0x194   :  { %1342 = vpow2.f32 %v1122_v29 }
 0x195   :  { %1251 = vmatpush3.bf16.msra.mxu0 %v1320_v3  ;;  %v1328_v3 = vld [vmem:[#allocation11 + $0x30] sm:$0xff]  }
 0x196   :  { %1252 = vmatprep.subr.bf16.mxu0 %v1557_v0 }
 0x199   :  { %1253 = vmatpush3.bf16.msra.mxu0 %v1321_v4  ;;  %v1329_v4 = vld [vmem:[#allocation11 + $0x38] sm:$0xff]  }
 0x19a   :  { %v1335_v53 = vpop.eup %1334 }
 0x19b   :  { %v691_v18 = vmul.f32 %v1335_v53, %v687_v31  ;;  %v690_v25 = vmul.f32 %v1335_v53, %v686_v34  ;;  %v1337_v33 = vpop.eup %1336 }
 0x19c   :  { %v1339_v59 = vpop.eup %1338 }
 0x19d   :  { %v693_v58 = vmax.f32 %v691_v18, 0.0  ;;  %v692_v54 = vmax.f32 %v690_v25, 0.0  ;;  %v1341_v44 = vpop.eup %1340 }
 0x19e   :  { %v1343_v51 = vpop.eup %1342  ;;  %v494_v48 = vadd.f32 1.0, %v1341_v44 }
 0x19f   :  { %v694_v52 = vmul.f32 %v1337_v33, %v692_v54  ;;  %v695_v61 = vmul.f32 %v1339_v59, %v693_v58  ;;  %v495_v49 = vadd.f32 1.0, %v1343_v51 }
 0x1a1   :  { %v696_v55 = vpack.c.bf16 %v695_v61, %v694_v52 }
 0x1a3   :  { %1235 = vmatmul.mubr.bf16.vlgmr.msra.gmra.mrb[0].mxu1 %v696_v55 }
 0x1a4   :  { %1274 = vmatprep.mubr.msk.bf16.mxu1 %vm1558_vm0, %v1557_v0  ;;  %1259 = vmatpush3.bf16.msra.mxu1 %v1322_v60 }
 0x1a5   :  { %1260 = vmatprep.subr.bf16.mxu1 %v1557_v0 }
 0x1a8   :  { %1261 = vmatpush3.bf16.msra.mxu1 %v1323_v63 }
 0x1a9   :  { %1262 = vmatprep.subr.bf16.mxu1 %v1557_v0 }
 0x1ac   :  { %1263 = vmatpush3.bf16.msra.mxu1 %v1324_v62 }
 0x1ad   :  { %1264 = vmatprep.subr.bf16.mxu1 %v1557_v0 }
 0x1b0   :  { %1265 = vmatpush3.bf16.msra.mxu1 %v1325_v1 }
 0x1b1   :  { %1266 = vmatprep.subr.bf16.mxu1 %v1557_v0 }
 0x1b4   :  { %1267 = vmatpush3.bf16.msra.mxu1 %v1326_v8 }
 0x1b5   :  { %1268 = vmatprep.subr.bf16.mxu1 %v1557_v0 }
 0x1b8   :  { %1269 = vmatpush3.bf16.msra.mxu1 %v1327_v2 }
 0x1b9   :  { %1270 = vmatprep.subr.bf16.mxu1 %v1557_v0 }
 0x1bc   :  { %1271 = vmatpush3.bf16.msra.mxu1 %v1328_v3 }
 0x1bd   :  { %1272 = vmatprep.subr.bf16.mxu1 %v1557_v0 }
 0x1c0   :  { %1273 = vmatpush3.bf16.msra.mxu1 %v1329_v4 }
 0x276   :  { %v802_v6 = vpop.f32.mrb[0].mxu1 }
 0x277   :  { %v803_v7 = vadd.f32 %v1135_v5, %v802_v6  ;;  %v1236_v9 = vpop.f32.mrb[1].mxu1 }
 0x278   :  { %v805_v19 = vpop.f32.mrb[2].mxu1 }
 0x279   :  { %v806_v10 = vadd.f32 %v1135_v5, %v805_v19  ;;  %v1237_v11 = vpop.f32.mrb[3].mxu1  ;;  %v817_v12 = vmul.f32 %v803_v7, %v803_v7  ;;  %v1144_v5 = vld [vmem:[%s2032_s7] ss:$0 sm:$0xff] }
 0x27b   :  { %v809_v13 = vadd.f32 %v806_v10, %v803_v7  ;;  %v818_v14 = vmul.f32 %v806_v10, %v806_v10 }
 0x27d   :  { %v810_v15 = vrot.slane %v809_v13, 4  ;;  %v819_v17 = vadd.f32 %v818_v14, %v817_v12 }
 0x27f   :  { %v811_v22 = vadd.f32 %v810_v15, %v809_v13  ;;  %v820_v23 = vrot.slane %v819_v17, 4 }
 0x281   :  { %v812_v46 = vrot.slane %v811_v22, 2  ;;  %v821_v27 = vadd.f32 %v820_v23, %v819_v17 }
 0x283   :  { %v813_v21 = vadd.f32 %v812_v46, %v811_v22  ;;  %v822_v30 = vrot.slane %v821_v27, 2 }
 0x285   :  { %v814_v31 = vrot.slane %v813_v21, 1  ;;  %v823_v34 = vadd.f32 %v822_v30, %v821_v27  ;;  %v1123_v27 = vmul.f32 -1.442695, %v530_v41 }
 0x287   :  { %v815_v35 = vadd.f32 %v814_v31, %v813_v21  ;;  %v824_v37 = vrot.slane %v823_v34, 1 }
 0x289   :  { %v816_v43 = vmul.f32 0.0625, %v815_v35  ;;  %v825_v36 = vadd.f32 %v824_v37, %v823_v34 }
 0x28b   :  { %v826_v39 = vmul.f32 0.0625, %v825_v36  ;;  %v827_v47 = vmul.f32 %v816_v43, %v816_v43  ;;  %v831_v32 = vsub.f32 %v806_v10, %v816_v43  ;;  %v830_v26 = vsub.f32 %v803_v7, %v816_v43 }
 0x28d   :  { %v828_v45 = vsub.f32 %v826_v39, %v827_v47 }
 0x28f   :  { %v829_v56 = vmax.f32 %v828_v45, 0.0 }
 0x291   :  { %v832_v50 = vadd.f32 1e-05, %v829_v56 }
 0x293   :  { %1344 = vrsqrt.f32 %v832_v50 }
 0x294   :  { %1346 = vrcp.f32 %v494_v48 }
 0x295   :  { %1348 = vrcp.f32 %v495_v49 }
 0x296   :  { %1350 = vpow2.f32 %v1123_v27 }
 0x297   :  { %1352 = vpow2.f32 %v1124_v28 }
 0x29d   :  { %v1345_v53 = vpop.eup %1344 }
 0x29e   :  { %v835_v18 = vmul.f32 %v1345_v53, %v831_v32  ;;  %v834_v25 = vmul.f32 %v1345_v53, %v830_v26  ;;  %v1347_v33 = vpop.eup %1346 }
 0x29f   :  { %v1349_v59 = vpop.eup %1348 }
 0x2a0   :  { %v837_v58 = vmax.f32 %v835_v18, 0.0  ;;  %v836_v54 = vmax.f32 %v834_v25, 0.0  ;;  %v1351_v38 = vpop.eup %1350  ;;  %v1153_v18 = vld [vmem:[%s2034_s9] ss:$0 sm:$0xff] }
 0x2a1   :  { %v1353_v47 = vpop.eup %1352  ;;  %v538_v20 = vadd.f32 1.0, %v1351_v38 }
 0x2a2   :  { %v838_v52 = vmul.f32 %v1347_v33, %v836_v54  ;;  %v839_v61 = vmul.f32 %v1349_v59, %v837_v58  ;;  %v539_v42 = vadd.f32 1.0, %v1353_v47 }
 0x2a4   :  { %v840_v55 = vpack.c.bf16 %v839_v61, %v838_v52 }
 0x2a6   :  { %1255 = vmatmul.mubr.bf16.vlgmr.msra.gmra.mrb[4].mxu0 %v840_v55 }
 0x379   :  { %v946_v6 = vpop.f32.mrb[4].mxu0 }
 0x37a   :  { %v947_v7 = vadd.f32 %v1144_v5, %v946_v6  ;;  %v1256_v9 = vpop.f32.mrb[5].mxu0 }
 0x37b   :  { %v949_v19 = vpop.f32.mrb[6].mxu0 }
 0x37c   :  { %v950_v10 = vadd.f32 %v1144_v5, %v949_v19  ;;  %v1257_v11 = vpop.f32.mrb[7].mxu0  ;;  %v961_v12 = vmul.f32 %v947_v7, %v947_v7 }
 0x37e   :  { %v953_v13 = vadd.f32 %v950_v10, %v947_v7  ;;  %v962_v14 = vmul.f32 %v950_v10, %v950_v10 }
 0x380   :  { %v954_v15 = vrot.slane %v953_v13, 4  ;;  %v963_v17 = vadd.f32 %v962_v14, %v961_v12 }
 0x382   :  { %v955_v22 = vadd.f32 %v954_v15, %v953_v13  ;;  %v964_v23 = vrot.slane %v963_v17, 4 }
 0x384   :  { %v956_v0 = vrot.slane %v955_v22, 2  ;;  %v965_v46 = vadd.f32 %v964_v23, %v963_v17 }
 0x386   :  { %v957_v29 = vadd.f32 %v956_v0, %v955_v22  ;;  %v966_v21 = vrot.slane %v965_v46, 2 }
 0x388   :  { %v958_v30 = vrot.slane %v957_v29, 1  ;;  %v967_v31 = vadd.f32 %v966_v21, %v965_v46 }
 0x38a   :  { %v959_v34 = vadd.f32 %v958_v30, %v957_v29  ;;  %v968_v35 = vrot.slane %v967_v31, 1 }
 0x38c   :  { %v960_v37 = vmul.f32 0.0625, %v959_v34  ;;  %v969_v24 = vadd.f32 %v968_v35, %v967_v31 }
 0x38e   :  { %v970_v43 = vmul.f32 0.0625, %v969_v24  ;;  %v971_v36 = vmul.f32 %v960_v37, %v960_v37  ;;  %v975_v40 = vsub.f32 %v950_v10, %v960_v37  ;;  %v974_v16 = vsub.f32 %v947_v7, %v960_v37 }
 0x390   :  { %v972_v41 = vsub.f32 %v970_v43, %v971_v36 }
 0x392   :  { %v973_v39 = vmax.f32 %v972_v41, 0.0 }
 0x394   :  { %v976_v57 = vadd.f32 1e-05, %v973_v39 }
 0x396   :  { %1354 = vrsqrt.f32 %v976_v57 }
 0x397   :  { %1356 = vrcp.f32 %v538_v20 }
 0x398   :  { %1358 = vrcp.f32 %v539_v42 }
 0x3a0   :  { %v1355_v32 = vpop.eup %1354 }
 0x3a1   :  { %v979_v26 = vmul.f32 %v1355_v32, %v975_v40  ;;  %v978_v45 = vmul.f32 %v1355_v32, %v974_v16  ;;  %v1357_v44 = vpop.eup %1356 }
 0x3a2   :  { %v1359_v50 = vpop.eup %1358 }
 0x3a3   :  { %v981_v56 = vmax.f32 %v979_v26, 0.0  ;;  %v980_v51 = vmax.f32 %v978_v45, 0.0 }
 0x3a5   :  { %v982_v48 = vmul.f32 %v1357_v44, %v980_v51  ;;  %v983_v49 = vmul.f32 %v1359_v50, %v981_v56 }
 0x3a7   :  { %v984_v53 = vpack.c.bf16 %v983_v49, %v982_v48 }
 0x3a9   :  { %1275 = vmatmul.mubr.bf16.vlgmr.msra.gmra.mrb[4].mxu1 %v984_v53 }
 0x47c   :  { %v1090_v25 = vpop.f32.mrb[4].mxu1 }
 0x47d   :  { %v1091_v33 = vadd.f32 %v1153_v18, %v1090_v25  ;;  %v1276_v58 = vpop.f32.mrb[5].mxu1 }
 0x47e   :  { %v1093_v54 = vpop.f32.mrb[6].mxu1 }
 0x47f   :  { %1097 = vst [vmem:[#allocation14] sm:$0xff] %v1091_v33  ;;  %v1094_v59 = vadd.f32 %v1153_v18, %v1093_v54  ;;  %v1277_v52 = vpop.f32.mrb[7].mxu1 }
 0x481   :  { %1098 = vst [vmem:[#allocation14 + $0x8] sm:$0xff] %v1094_v59 }
 0x482   :  { %1525 = shalt.err (!%p1522_p4)
}
 0x483   :  { %s1526_s20 = scalar_lea.hbm %s2036_s11, 256 }
 0x484   :  { %p1527_p5 = scmp.ne.s32.totalorder %s2036_s11, %s1526_s20  ;;  %p1530_p6 = scmp.lt.u32.totalorder %s1526_s20, %s2036_s11 }
 0x486   :  { %p1532_p7 = pnand %p1530_p6, %p1527_p5 }
 0x488   :  { %1535 = shalt.err (!%p1532_p7)
}
 0x489   :  { %1110 = dma.vmem_to_hbm [thread:$0]  %s1105_s15, 256, %s2036_s11, [#allocation4], %s1547_s27, %s1547_s27, %s1548_s28  }
 0x48a   :  { %1544 = dma.done.wait [#allocation4], 256  }
 0x48b   :  { %1545 = vsyncadd [#allocation4], 4294967040 }
 0x48c   :  { %1114 = vsyncpa [#allocation3], 1 }
 0x48d   :  { %1115 = vsyncpa [#allocation6], 1 }
 0x48e   :  { %1116 = vsyncpa [#allocation9], 1 }
 0x48f   :  { %1117 = vsyncpa [#allocation12], 1 }
 0x490   :  { %1118 = vsyncpa [#allocation4], 1 }

</bundles_post_ra>
